<compile_context>
chip_gen: v6e
topology: v6e:2x2x1
jax: 0.10.0
libtpu: 0.0.40
codegen_flags: <defaults>
</compile_context>

<pallas_src>
import functools

import jax
import jax.numpy as jnp
from jax.experimental import pallas as pl
from jax.experimental.pallas import tpu as pltpu


# ----------------------------- Pallas kernel ------------------------------- #

def _stie_w_kernel(wt_ref, x_ref, o_ref):
    """One batch tile (Bt elements) per grid step.

    wt_ref : (D, C)      transposed Stiefel weight (resident across grid steps)
    x_ref  : (Bt, C, M)  flattened inputs, M = H*W on lanes
    o_ref  : (Bt, D, M)  out[b] = W^T @ x[b]
    """
    wt = wt_ref[...]                                   # (D, C), load once
    bt = x_ref.shape[0]                                # small & static -> unrolled
    for b in range(bt):
        o_ref[b] = jnp.dot(
            wt, x_ref[b],
            preferred_element_type=jnp.float32,        # f32 accumulation on the MXU
        ).astype(o_ref.dtype)


@functools.partial(jax.jit, static_argnames=("block_b",))
def stie_w_forward(x, weight, *, block_b=2):
    """x: (B, C, H, W) float32, weight: (C, D) with orthonormal columns.

    Returns (B, D, H, W) = reshape(weight.T @ reshape(x, (B, C, H*W))).
    """
    B, C, H, W = x.shape
    Cw, D = weight.shape
    assert Cw == C and C >= D
    M = H * W

    bt = min(block_b, B)
    assert B % bt == 0, "demo wrapper assumes block_b divides B"

    x3 = x.reshape(B, C, M)          # lane-dense flattening of the spatial extent
    wt = weight.T                    # (D, C): avoids any in-kernel transpose

    out3 = pl.pallas_call(
        _stie_w_kernel,
        out_shape=jax.ShapeDtypeStruct((B, D, M), x.dtype),
        grid_spec=pltpu.PrefetchScalarGridSpec(
            num_scalar_prefetch=0,
            grid=(B // bt,),
            in_specs=[
                pl.BlockSpec((D, C), lambda b: (0, 0)),        # weight, VMEM-resident
                pl.BlockSpec((bt, C, M), lambda b: (b, 0, 0)),  # batch tile of inputs
            ],
            out_specs=pl.BlockSpec((bt, D, M), lambda b: (b, 0, 0)),
        ),
        compiler_params=pltpu.CompilerParams(
            dimension_semantics=("parallel",)),
    )(wt, x3)

    return out3.reshape(B, D, H, W)


# ----------------------------- reference ----------------------------------- #

def ref_forward(x, weight):
    """Pure-JAX reference of Stie_W.forward."""
    return jnp.einsum('cd,bchw->bdhw', weight, x)


# ----------------------------- demo / check -------------------------------- #

if __name__ == "__main__":
    # batch=4, input_dim (channels)=8, output_dim=4, spatial H=4, W=32 (H*W=128 lanes)
    B, C, D, H, W = 4, 8, 4, 4, 32

    key = jax.random.PRNGKey(0)
    kx, kw = jax.random.split(key)

    x = jax.random.normal(kx, (B, C, H, W), dtype=jnp.float32)

    # nn.init.orthogonal_: orthonormal columns via QR of a Gaussian matrix.
    a = jax.random.normal(kw, (C, D), dtype=jnp.float32)
    q, r = jnp.linalg.qr(a)
    weight = q * jnp.sign(jnp.diagonal(r))[None, :]          # (C, D), W^T W = I_D

    out = stie_w_forward(x, weight, block_b=2)
    out = jax.block_until_ready(out)

    ref = ref_forward(x, weight)
    assert out.shape == (B, D, H, W)
    err = float(jnp.max(jnp.abs(out - ref)))
    assert jnp.allclose(out, ref, atol=1e-5, rtol=1e-5), f"max abs err = {err}"

    print("KERNEL_OK")
</pallas_src>

<mosaic_0001>
module attributes {stable_mosaic.version = 11 : i64} {
  func.func @_stie_w_kernel(%arg0: i32, %arg1: memref<4x8xf32, #tpu.memory_space<vmem>>, %arg2: memref<2x8x128xf32, #tpu.memory_space<vmem>>, %arg3: memref<2x4x128xf32, #tpu.memory_space<vmem>>) attributes {dimension_semantics = [#tpu.dimension_semantics<parallel>], iteration_bounds = array<i64: 2>, scalar_prefetch = 0 : i64, scratch_operands = 0 : i64, tpu.core_type = #tpu.core_type<tc>, window_params = [{pipeline_mode = #tpu.pipeline_mode<synchronous>, transform_indices = @transform_0, window_bounds = array<i64: 4, 8>}, {transform_indices = @transform_1, window_bounds = array<i64: 2, 8, 128>}, {transform_indices = @transform_2, window_bounds = array<i64: 2, 4, 128>}]} {
    %c0 = arith.constant 0 : index
    %c0_0 = arith.constant 0 : index
    %0 = vector.load %arg1[%c0, %c0_0] : memref<4x8xf32, #tpu.memory_space<vmem>>, vector<4x8xf32>
    %c0_1 = arith.constant 0 : index
    %c0_2 = arith.constant 0 : index
    %c0_3 = arith.constant 0 : index
    %1 = vector.load %arg2[%c0_1, %c0_2, %c0_3] : memref<2x8x128xf32, #tpu.memory_space<vmem>>, vector<1x8x128xf32>
    %2 = vector.shape_cast %1 : vector<1x8x128xf32> to vector<8x128xf32>
    %cst = arith.constant dense<0.000000e+00> : vector<4x128xf32>
    %3 = tpu.matmul %0, %2, %cst {dimension_numbers = #tpu.dot_dimension_numbers<[1], [0], [0], [1], [0, 0, 1, 1], [], []>} : vector<4x8xf32>, vector<8x128xf32>, vector<4x128xf32> -> vector<4x128xf32>
    %c0_4 = arith.constant 0 : index
    %c0_5 = arith.constant 0 : index
    %c0_6 = arith.constant 0 : index
    %4 = vector.load %arg3[%c0_4, %c0_5, %c0_6] : memref<2x4x128xf32, #tpu.memory_space<vmem>>, vector<1x4x128xf32>
    %5 = vector.shape_cast %4 : vector<1x4x128xf32> to vector<4x128xf32>
    %6 = vector.shape_cast %3 : vector<4x128xf32> to vector<1x4x128xf32>
    tpu.vector_store %arg3[%c0_4, %c0_5, %c0_6], %6 {strides = array<i32>} : memref<2x4x128xf32, #tpu.memory_space<vmem>>, vector<1x4x128xf32>,
    %c1 = arith.constant 1 : index
    %c0_7 = arith.constant 0 : index
    %c0_8 = arith.constant 0 : index
    %7 = vector.load %arg2[%c1, %c0_7, %c0_8] : memref<2x8x128xf32, #tpu.memory_space<vmem>>, vector<1x8x128xf32>
    %8 = vector.shape_cast %7 : vector<1x8x128xf32> to vector<8x128xf32>
    %cst_9 = arith.constant dense<0.000000e+00> : vector<4x128xf32>
    %9 = tpu.matmul %0, %8, %cst_9 {dimension_numbers = #tpu.dot_dimension_numbers<[1], [0], [0], [1], [0, 0, 1, 1], [], []>} : vector<4x8xf32>, vector<8x128xf32>, vector<4x128xf32> -> vector<4x128xf32>
    %c1_10 = arith.constant 1 : index
    %c0_11 = arith.constant 0 : index
    %c0_12 = arith.constant 0 : index
    %10 = vector.load %arg3[%c1_10, %c0_11, %c0_12] : memref<2x4x128xf32, #tpu.memory_space<vmem>>, vector<1x4x128xf32>
    %11 = vector.shape_cast %10 : vector<1x4x128xf32> to vector<4x128xf32>
    %12 = vector.shape_cast %9 : vector<4x128xf32> to vector<1x4x128xf32>
    tpu.vector_store %arg3[%c1_10, %c0_11, %c0_12], %12 {strides = array<i32>} : memref<2x4x128xf32, #tpu.memory_space<vmem>>, vector<1x4x128xf32>,
    return
  }
  func.func @transform_0(%arg0: i32) -> (i32, i32) {
    %c0_i32 = arith.constant 0 : i32
    %c0_i32_0 = arith.constant 0 : i32
    %c0_i32_1 = arith.constant 0 : i32
    return %c0_i32, %c0_i32_0 : i32, i32
  }
  func.func @transform_1(%arg0: i32) -> (i32, i32, i32) {
    %c0_i32 = arith.constant 0 : i32
    %c0_i32_0 = arith.constant 0 : i32
    %c0_i32_1 = arith.constant 0 : i32
    return %arg0, %c0_i32, %c0_i32_0 : i32, i32, i32
  }
  func.func @transform_2(%arg0: i32) -> (i32, i32, i32) {
    %c0_i32 = arith.constant 0 : i32
    %c0_i32_0 = arith.constant 0 : i32
    %c0_i32_1 = arith.constant 0 : i32
    return %arg0, %c0_i32, %c0_i32_0 : i32, i32, i32
  }
}

</mosaic_0001>

<bundles_post_ra>
// kernel: stie_w_forward.1
= control target key start
LH: loop header
LB: loop body
LE: loop exit
PB: predicated region body
PF: predicated region fallthrough
CT: control target
= control target key end

     0   :  { %s418_s9 = smov 0   ;;  %s438_s0 = inlined_call_operand.vmem [shape: f32[4,8], index: 0, kind: input, shape index: {}]   ;;  %s439_s1 = inlined_call_operand.vmem [shape: f32[4,8,128], index: 1, kind: input, shape index: {}]   ;;  %s440_s2 = inlined_call_operand.vmem [shape: f32[4,4,128], index: 2, kind: output, shape index: {}]  }
   0x1 LB: > { %s354_s10 = sadd.s32 4294967295, %s399_s9   ;;  %p358_p0 = scmp.ge.s32.totalorder %s399_s9, 1  ;;  %s399_s9 = sphi %s418_s9, %s12_s9  }
   0x2   : > { %p113_p1 = scmp.lt.s32.totalorder %s399_s9, 3 }
   0x4   : > { %p114_p2 = pnand %p358_p0, %p113_p1 }
   0x5   : > { %s359_s11 = sshll.u32 (!%p114_p2), %s354_s10, 1 }
   0x6   : > { %117 = sbr.rel (%p114_p2) target bundleno = 211 (0xd3), region = 28  ;;  %p136_p3 = scmp.lt.s32.totalorder (!%p114_p2), %s359_s11, 3 }
   0xb   : > { %v401_v0 = vmov 0.0   ;;  %vm402_vm0 = vmmov 0   ;;  %s442_s11 = smov (!%p136_p3, %s359_s11), 3  ;;  %v147_v1 = vld [vmem:[%s438_s0] sm:$0xf]  ;;  %vm149_vm1 = vcmask 64512  }
   0xc   : > { %373 = vmatprep.subr.mxu0 %v401_v0  ;;  %378 = vmatprep.subr.mxu1 %v401_v0  ;;  %s360_s12 = sshll.u32 %s442_s11, 3  ;;  %s362_s18 = sshll.u32 %s442_s11, 2 }
   0xd   : > { %375 = vmatprep.mubr.msk.f32.mxu0 %vm402_vm0, %v401_v0  ;;  %380 = vmatprep.mubr.msk.f32.mxu1 %vm402_vm0, %v401_v0  ;;  %s139_s15 = scalar_lea.vmem %s439_s1, %s360_s12  ;;  %s145_s21 = scalar_lea.vmem %s440_s2, %s362_s18 }
   0xe   : > { %v148_v2 = vld [vmem:[%s139_s15] sm:$0xff]  ;;  %v364_v3 = vld [vmem:[%s139_s15 + $0x8] sm:$0xff] }
   0xf   : > { %374 = vmatpush3.msra.mxu0 %v148_v2  ;;  %379 = vmatpush3.msra.mxu1 %v364_v3 }
  0x10   : > { %376 = vmatmul.mubr.msk.f32.vlgmr.msra.gmra.mxu0 %vm149_vm1, %v147_v1  ;;  %381 = vmatmul.mubr.msk.f32.vlgmr.msra.gmra.mxu1 %vm149_vm1, %v147_v1 }
  0xd0   : > { %v219_v4 = vpop.f32.mrf.mxu0  ;;  %v292_v5 = vpop.f32.mrf.mxu1 }
  0xd1   : > { %223 = vst [vmem:[%s145_s21] sm:$0xf] %v219_v4  ;;  %366 = vst [vmem:[%s145_s21 + $0x4] sm:$0xf] %v292_v5 }
  0xd2   : > { %v377_v6 = vpop.f32.mrf.mxu0  ;;  %v382_v7 = vpop.f32.mrf.mxu1 }
  0xd3 PF: > { %s12_s9 = sadd.s32 1, %s399_s9  }
  0xd4   : > { %p9_p4 = scmp.ge.s32.totalorder %s12_s9, 4  }
  0xd6   :  { %11 = sbr.rel (!%p9_p4) target bundleno = 1 (0x1), region = 60 }

</bundles_post_ra>
